<compile_context>
chip_gen: v5e
topology: v5e:2x2
jax: 0.10.0
libtpu: 0.0.40
codegen_flags: <defaults>
</compile_context>

<pallas_src>
import jax
import jax.numpy as jnp
from jax.experimental import pallas as pl
from jax.experimental.pallas import tpu as pltpu


def _round_up(n, m):
    return ((n + m - 1) // m) * m


def mmdqn_kernel(x_ref, w1_ref, b1_ref, w2_ref, b2_ref, o_ref):
    # x_ref : (input_dim, TB)   activations, batch on lanes
    # w1_ref: (hidden, input_dim)   PyTorch layout (out, in)
    # b1_ref: (hidden, 1)
    # w2_ref: (out_dim, hidden)
    # b2_ref: (out_dim, 1)
    # o_ref : (out_dim, TB)
    h = jnp.dot(w1_ref[...], x_ref[...], preferred_element_type=jnp.float32)
    h = jnp.maximum(h + b1_ref[...], 0.0)          # bias broadcast over lanes, ReLU
    out = jnp.dot(w2_ref[...], h, preferred_element_type=jnp.float32)
    o_ref[...] = (out + b2_ref[...]).astype(o_ref.dtype)


def mmdqn_forward(x, w1, b1, w2, b2, *, tb=1024):
    """MMDQN forward.

    x : (B, input_dim) f32
    w1: (hidden, input_dim) f32   (PyTorch nn.Linear weight layout)
    b1: (hidden,)           f32
    w2: (out_dim, hidden)   f32
    b2: (out_dim,)          f32
    returns (B, out_dim) f32  ==  relu(x @ w1.T + b1) @ w2.T + b2
    """
    B, input_dim = x.shape
    hidden = w1.shape[0]
    out_dim = w2.shape[0]

    # Batch tile on the lane axis: multiple of 128, capped at the padded batch.
    tb = min(tb, _round_up(B, 128))
    b_pad = _round_up(B, tb)

    # Transpose so batch lives on lanes; zero-pad batch to a tile multiple.
    x_t = jnp.pad(x.T, ((0, 0), (0, b_pad - B)))            # (input_dim, b_pad)
    b1_2d = b1.reshape(hidden, 1)
    b2_2d = b2.reshape(out_dim, 1)

    grid = (b_pad // tb,)

    out_t = pl.pallas_call(
        mmdqn_kernel,
        out_shape=jax.ShapeDtypeStruct((out_dim, b_pad), jnp.float32),
        grid_spec=pltpu.PrefetchScalarGridSpec(
            num_scalar_prefetch=0,
            grid=grid,
            in_specs=[
                pl.BlockSpec((input_dim, tb), lambda i: (0, i)),   # x (batch-tiled)
                pl.BlockSpec((hidden, input_dim), lambda i: (0, 0)),  # w1 (resident)
                pl.BlockSpec((hidden, 1), lambda i: (0, 0)),          # b1 (resident)
                pl.BlockSpec((out_dim, hidden), lambda i: (0, 0)),    # w2 (resident)
                pl.BlockSpec((out_dim, 1), lambda i: (0, 0)),         # b2 (resident)
            ],
            out_specs=pl.BlockSpec((out_dim, tb), lambda i: (0, i)),
        ),
        compiler_params=pltpu.CompilerParams(
            dimension_semantics=("parallel",),
        ),
    )(x_t, w1, b1_2d, w2, b2_2d)

    # Back to the PyTorch-facing (B, out_dim) layout, dropping batch padding.
    return out_t[:, :B].T


def init_params(key, input_dim, hidden, out_dim):
    """Deterministic synthetic init, PyTorch-Linear-like uniform fan-in bound.

    Weights kept in PyTorch (out, in) layout; biases 1-D.
    """
    k1, k2, k3, k4 = jax.random.split(key, 4)
    bound1 = 1.0 / jnp.sqrt(input_dim)
    bound2 = 1.0 / jnp.sqrt(hidden)
    w1 = jax.random.uniform(k1, (hidden, input_dim), jnp.float32, -bound1, bound1)
    b1 = jax.random.uniform(k2, (hidden,), jnp.float32, -bound1, bound1)
    w2 = jax.random.uniform(k3, (out_dim, hidden), jnp.float32, -bound2, bound2)
    b2 = jax.random.uniform(k4, (out_dim,), jnp.float32, -bound2, bound2)
    return w1, b1, w2, b2


if __name__ == "__main__":
    # Small shapes consistent with the module: CartPole-like obs dim 4,
    # action_num=2, n_particle=5 -> output dim 10, hidden=10.
    B = 8
    input_dim = 4
    hidden = 10
    action_num = 2
    n_particle = 5
    out_dim = action_num * n_particle

    key = jax.random.PRNGKey(0)
    kx, kp = jax.random.split(key)
    x = jax.random.normal(kx, (B, input_dim), dtype=jnp.float32)
    w1, b1, w2, b2 = init_params(kp, input_dim, hidden, out_dim)

    out = mmdqn_forward(x, w1, b1, w2, b2)
    out = jax.block_until_ready(out)

    # Pure-JAX reference of the same forward semantics (PyTorch nn.Linear).
    ref = jnp.maximum(x @ w1.T + b1, 0.0) @ w2.T + b2
    assert out.shape == (B, out_dim)
    assert jnp.allclose(out, ref, atol=1e-5), "mismatch vs reference"

    print("KERNEL_OK")
</pallas_src>

<mosaic_0001>
module attributes {stable_mosaic.version = 11 : i64} {
  func.func @mmdqn_kernel(%arg0: i32, %arg1: memref<4x128xf32, #tpu.memory_space<vmem>>, %arg2: memref<10x4xf32, #tpu.memory_space<vmem>>, %arg3: memref<10x1xf32, #tpu.memory_space<vmem>>, %arg4: memref<10x10xf32, #tpu.memory_space<vmem>>, %arg5: memref<10x1xf32, #tpu.memory_space<vmem>>, %arg6: memref<10x128xf32, #tpu.memory_space<vmem>>) attributes {dimension_semantics = [#tpu.dimension_semantics<parallel>], iteration_bounds = array<i64: 1>, scalar_prefetch = 0 : i64, scratch_operands = 0 : i64, tpu.core_type = #tpu.core_type<tc>, window_params = [{transform_indices = @transform_0, window_bounds = array<i64: 4, 128>}, {pipeline_mode = #tpu.pipeline_mode<synchronous>, transform_indices = @transform_1, window_bounds = array<i64: 10, 4>}, {pipeline_mode = #tpu.pipeline_mode<synchronous>, transform_indices = @transform_2, window_bounds = array<i64: 10, 1>}, {pipeline_mode = #tpu.pipeline_mode<synchronous>, transform_indices = @transform_3, window_bounds = array<i64: 10, 10>}, {pipeline_mode = #tpu.pipeline_mode<synchronous>, transform_indices = @transform_4, window_bounds = array<i64: 10, 1>}, {transform_indices = @transform_5, window_bounds = array<i64: 10, 128>}]} {
    %c0 = arith.constant 0 : index
    %c0_0 = arith.constant 0 : index
    %0 = vector.load %arg2[%c0, %c0_0] : memref<10x4xf32, #tpu.memory_space<vmem>>, vector<10x4xf32>
    %c0_1 = arith.constant 0 : index
    %c0_2 = arith.constant 0 : index
    %1 = vector.load %arg1[%c0_1, %c0_2] : memref<4x128xf32, #tpu.memory_space<vmem>>, vector<4x128xf32>
    %cst = arith.constant dense<0.000000e+00> : vector<10x128xf32>
    %2 = tpu.matmul %0, %1, %cst {dimension_numbers = #tpu.dot_dimension_numbers<[1], [0], [0], [1], [0, 0, 1, 1], [], []>} : vector<10x4xf32>, vector<4x128xf32>, vector<10x128xf32> -> vector<10x128xf32>
    %c0_3 = arith.constant 0 : index
    %c0_4 = arith.constant 0 : index
    %3 = vector.load %arg3[%c0_3, %c0_4] : memref<10x1xf32, #tpu.memory_space<vmem>>, vector<10x1xf32>
    %4 = vector.broadcast %3 : vector<10x1xf32> to vector<10x128xf32>
    %5 = arith.addf %2, %4 : vector<10x128xf32>
    %cst_5 = arith.constant 0.000000e+00 : f32
    %6 = vector.broadcast %cst_5 : f32 to vector<10x128xf32>
    %7 = arith.maximumf %5, %6 : vector<10x128xf32>
    %c0_6 = arith.constant 0 : index
    %c0_7 = arith.constant 0 : index
    %8 = vector.load %arg4[%c0_6, %c0_7] : memref<10x10xf32, #tpu.memory_space<vmem>>, vector<10x10xf32>
    %cst_8 = arith.constant dense<0.000000e+00> : vector<10x128xf32>
    %9 = tpu.matmul %8, %7, %cst_8 {dimension_numbers = #tpu.dot_dimension_numbers<[1], [0], [0], [1], [0, 0, 1, 1], [], []>} : vector<10x10xf32>, vector<10x128xf32>, vector<10x128xf32> -> vector<10x128xf32>
    %c0_9 = arith.constant 0 : index
    %c0_10 = arith.constant 0 : index
    %10 = vector.load %arg5[%c0_9, %c0_10] : memref<10x1xf32, #tpu.memory_space<vmem>>, vector<10x1xf32>
    %11 = vector.broadcast %10 : vector<10x1xf32> to vector<10x128xf32>
    %12 = arith.addf %9, %11 : vector<10x128xf32>
    %c0_11 = arith.constant 0 : index
    %c0_12 = arith.constant 0 : index
    %13 = vector.load %arg6[%c0_11, %c0_12] : memref<10x128xf32, #tpu.memory_space<vmem>>, vector<10x128xf32>
    tpu.vector_store %arg6[%c0_11, %c0_12], %12 {strides = array<i32>} : memref<10x128xf32, #tpu.memory_space<vmem>>, vector<10x128xf32>,
    return
  }
  func.func @transform_0(%arg0: i32) -> (i32, i32) {
    %c0_i32 = arith.constant 0 : i32
    %c0_i32_0 = arith.constant 0 : i32
    return %c0_i32, %arg0 : i32, i32
  }
  func.func @transform_1(%arg0: i32) -> (i32, i32) {
    %c0_i32 = arith.constant 0 : i32
    %c0_i32_0 = arith.constant 0 : i32
    %c0_i32_1 = arith.constant 0 : i32
    return %c0_i32, %c0_i32_0 : i32, i32
  }
  func.func @transform_2(%arg0: i32) -> (i32, i32) {
    %c0_i32 = arith.constant 0 : i32
    %c0_i32_0 = arith.constant 0 : i32
    %c0_i32_1 = arith.constant 0 : i32
    return %c0_i32, %c0_i32_0 : i32, i32
  }
  func.func @transform_3(%arg0: i32) -> (i32, i32) {
    %c0_i32 = arith.constant 0 : i32
    %c0_i32_0 = arith.constant 0 : i32
    %c0_i32_1 = arith.constant 0 : i32
    return %c0_i32, %c0_i32_0 : i32, i32
  }
  func.func @transform_4(%arg0: i32) -> (i32, i32) {
    %c0_i32 = arith.constant 0 : i32
    %c0_i32_0 = arith.constant 0 : i32
    %c0_i32_1 = arith.constant 0 : i32
    return %c0_i32, %c0_i32_0 : i32, i32
  }
  func.func @transform_5(%arg0: i32) -> (i32, i32) {
    %c0_i32 = arith.constant 0 : i32
    %c0_i32_0 = arith.constant 0 : i32
    return %c0_i32, %arg0 : i32, i32
  }
}

</mosaic_0001>

<bundles_post_ra>
// kernel: tpu_custom_call.1
= control target key start
LH: loop header
LB: loop body
LE: loop exit
PB: predicated region body
PF: predicated region fallthrough
CT: control target
= control target key end

     0   :  { %vm43_vm0 = vcmask 1043456   ;;  %vm36_vm1 = vcmask 31744   ;;  %s245_s0 = inlined_call_operand.vmem [shape: f32[4,128], index: 0, kind: input, shape index: {}]   ;;  %s246_s1 = inlined_call_operand.vmem [shape: f32[10,4], index: 1, kind: input, shape index: {}]   ;;  %s247_s2 = inlined_call_operand.vmem [shape: f32[10,1], index: 2, kind: input, shape index: {}]   ;;  %s248_s3 = inlined_call_operand.vmem [shape: f32[10,10], index: 3, kind: input, shape index: {}]   ;;  %s249_s4 = inlined_call_operand.vmem [shape: f32[10,1], index: 4, kind: input, shape index: {}]   ;;  %s250_s5 = inlined_call_operand.hbm [shape: f32[10,128], index: 5, kind: output, shape index: {}]  }
   0x1   :  { %v23_v0 = vld [vmem:[%s245_s0] sm:$0xf]  ;;  %v22_v2 = vld [vmem:[%s246_s1 + $0x8] sm:$0x3] }
   0x2   :  { %v21_v1 = vld [vmem:[%s246_s1] sm:$0xff]  ;;  %140 = vmatpush.msk.msra.mxu0 %vm43_vm0, %v23_v0  ;;  %146 = vmatpush.msk.msra.mxu3 %vm43_vm0, %v23_v0  ;;  %v25_v3 = vld [vmem:[%s247_s2 + $0x8] sm:$0x3] }
   0x3   :  { %141 = vmatmul.msk.f32.vlgmr.msra.gmra.mxu0 %vm36_vm1, %v21_v1  ;;  %142 = vmatmul.msk.f32.vlgmr.msra.gmra.mxu3 %vm36_vm1, %v22_v2 }
   0x4   :  { %10 = vsyncpa [#allocation3], 0  ;;  %v181_v4 = vmov 0   ;;  %v24_v5 = vld [vmem:[%s247_s2] sm:$0xff]  ;;  %v75_v7 = vld [vmem:[%s249_s4 + $0x8] sm:$0x3] }
   0x5   :  { %153 = vset.pattern.permute.xlu0 %v181_v4  ;;  %154 = vset.pattern.permute.xlu1 %v181_v4  ;;  %v74_v6 = vld [vmem:[%s249_s4] sm:$0xff]  ;;  %vm93_vm2 = vcmask 1041408   ;;  %vm86_vm3 = vcmask 80896   ;;  %v73_v17 = vld [vmem:[%s248_s3 + $0x8] sm:$0x3]  ;;  %s182_s4 = smov [#allocation2]  }
   0x6   :  { %33 = vperm.xlu0 %153, %v25_v3   ;;  %78 = vperm.xlu1 %154, %v74_v6   ;;  %v72_v16 = vld [vmem:[%s248_s3] sm:$0xff]  ;;  %s126_s8 = sshll.u32 %s182_s4, 4  ;;  %s128_s11 = sshll.u32 %s250_s5, 4  ;;  %s127_s8 = int_to_ptr.vmem [resolvable:$true] %s126_s8  ;;  %s129_s11 = int_to_ptr.hbm [resolvable:$true] %s128_s11 }
   0x7   :  { %s183_s3 = smov 128   ;;  %s184_s12 = smov 8  }
   0xe   :  { %28 = vperm.xlu0 %153, %v24_v5   ;;  %83 = vperm.xlu1 %154, %v75_v7  }
  0x78   :  { %v34_v8 = vpop.permute.xlu0 %33  ;;  %v79_v18 = vpop.permute.xlu1 %78 }
  0x80   :  { %v29_v9 = vpop.permute.xlu0 %28  ;;  %v64_v10 = vpop.f32.mrf.mxu0 }
  0x81   :  { %v65_v12 = vadd.f32 %v64_v10, %v29_v9  ;;  %v84_v21 = vpop.permute.xlu1 %83 }
  0x83   :  { %v70_v15 = vmax.f32 %v65_v12, 0.0 }
  0x86   :  { %v67_v11 = vpop.f32.mrf.mxu3 }
  0x87   :  { %v68_v13 = vadd.f32 %v67_v11, %v34_v8 }
  0x89   :  { %v71_v14 = vmax.f32 %v68_v13, 0.0 }
  0x8b   :  { %143 = vmatpush.msk.msra.mxu1 %vm93_vm2, %v71_v14  ;;  %147 = vmatpush.msk.msra.mxu2 %vm93_vm2, %v71_v14 }
  0x8d   :  { %112 = vmatpush.msra.mxu1 %v70_v15  ;;  %148 = vmatpush.msra.mxu2 %v70_v15 }
  0x8e   :  { %144 = vmatmul.msk.f32.vlgmr.msra.gmra.mxu1 %vm86_vm3, %v72_v16  ;;  %145 = vmatmul.msk.f32.vlgmr.msra.gmra.mxu2 %vm86_vm3, %v73_v17 }
 0x10b   :  { %v114_v19 = vpop.f32.mrf.mxu1 }
 0x10c   :  { %v115_v20 = vadd.f32 %v114_v19, %v79_v18 }
 0x10e   :  { %120 = vst [vmem:[#allocation2] sm:$0xff] %v115_v20 }
 0x111   :  { %v117_v22 = vpop.f32.mrf.mxu2 }
 0x112   :  { %v118_v23 = vadd.f32 %v117_v22, %v84_v21 }
 0x114   :  { %121 = vst [vmem:[#allocation2 + $0x8] sm:$0x3] %v118_v23 }
 0x115   :  { %134 = dma.vmem_to_hbm [thread:$0]  %s127_s8, 256, %s129_s11, [#allocation3], %s183_s3, %s183_s3, %s184_s12  }
 0x116   :  { %179 = dma.done.wait [#allocation3], 256  }
 0x117   :  { %180 = vsyncadd [#allocation3], 4294967040 }
 0x118   :  { %139 = vsyncpa [#allocation3], 1 }

</bundles_post_ra>
